<compile_context>
chip_gen: v6e
topology: v6e:2x2x1
jax: 0.10.0
libtpu: 0.0.40
codegen_flags: <defaults>
</compile_context>

<pallas_src>
import jax
import jax.numpy as jnp
from jax import lax
from jax.experimental import pallas as pl
from jax.experimental.pallas import tpu as pltpu


_VMEM_BUDGET_BYTES = 8 * 1024 * 1024      # per-step working-set budget (v5e-safe)
_MAX_TILE_E = 32768                       # absolute lane-tile cap
_INKERNEL_GATHER_MAX_NODES = 1024         # one-hot gather viable up to ~1K nodes
_VMEM_LIMIT_BYTES = 32 * 1024 * 1024      # scoped-VMEM limit (safe on v5e/v6e/v7x)


def edge_mlp_gather_kernel(eidx_ref, p_src_ref, p_dst_ref, b1_ref,
                           w2t_ref, b2_ref, w3_ref, b3_ref, o_ref):
    """One tile of edges: in-kernel one-hot gather fused with layer 1."""
    hp = lax.Precision.HIGHEST
    idx = eidx_ref[...]                                    # [2, tile_e] int32
    n_pad = p_src_ref.shape[1]
    tile_e = idx.shape[1]

    node_iota = lax.broadcasted_iota(jnp.int32, (n_pad, tile_e), 0)
    oh_src = (node_iota == idx[0:1, :]).astype(jnp.float32)    # [n_pad, tile_e]
    oh_dst = (node_iota == idx[1:2, :]).astype(jnp.float32)

    # Fused gather + layer 1:
    #   h1 = (W1a @ nfT)[:, src] + (W1b @ nfT)[:, dst] + b1
    h1 = (jnp.dot(p_src_ref[...], oh_src, precision=hp,
                  preferred_element_type=jnp.float32)
          + jnp.dot(p_dst_ref[...], oh_dst, precision=hp,
                    preferred_element_type=jnp.float32)
          + b1_ref[...])                                   # [H1, tile_e]
    h1 = jnp.maximum(h1, 0.0)

    # Layer 2.
    h2 = jnp.dot(w2t_ref[...], h1, precision=hp,
                 preferred_element_type=jnp.float32) + b2_ref[...]
    h2 = jnp.maximum(h2, 0.0)                              # [H2, tile_e]

    # Layer 3 (out dim = 1): VPU multiply + sublane reduction, no MXU pass.
    out = jnp.sum(h2 * w3_ref[...], axis=0, keepdims=True) + b3_ref[...]
    o_ref[...] = jnp.maximum(out, 0.0).astype(o_ref.dtype)     # [1, tile_e]


def edge_mlp_kernel(x_ref, w1t_ref, b1_ref, w2t_ref, b2_ref, w3_ref, b3_ref,
                    o_ref):
    """Fallback (large N): fused [2F, tile_e] feature tile through the MLP."""
    hp = lax.Precision.HIGHEST
    h1 = jnp.dot(w1t_ref[...], x_ref[...], precision=hp,
                 preferred_element_type=jnp.float32) + b1_ref[...]
    h1 = jnp.maximum(h1, 0.0)                              # [H1, tile_e]
    h2 = jnp.dot(w2t_ref[...], h1, precision=hp,
                 preferred_element_type=jnp.float32) + b2_ref[...]
    h2 = jnp.maximum(h2, 0.0)                              # [H2, tile_e]
    out = jnp.sum(h2 * w3_ref[...], axis=0, keepdims=True) + b3_ref[...]
    o_ref[...] = jnp.maximum(out, 0.0).astype(o_ref.dtype)     # [1, tile_e]


def _pick_tile_e(num_edges, per_edge_bytes):
    """Lane tile: multiple of 128, VMEM-budgeted, >=2 grid steps when possible."""
    half = pl.cdiv(num_edges, 2 * 128) * 128               # keep >=2 steps (v7x)
    budget_cap = max(128, (_VMEM_BUDGET_BYTES // per_edge_bytes) // 128 * 128)
    return max(128, min(_MAX_TILE_E, budget_cap, half))


def init_edge_model_params(key, in_size=3, hidden_size1=16, hidden_size2=16):
    """PyTorch-Linear-style init: U(-1/sqrt(fan_in), 1/sqrt(fan_in)).

    Weights stored as (in, out); biases as (out,).
    """
    dims = [(2 * in_size, hidden_size1), (hidden_size1, hidden_size2),
            (hidden_size2, 1)]
    params = []
    for (fan_in, fan_out) in dims:
        key, kw, kb = jax.random.split(key, 3)
        bound = 1.0 / jnp.sqrt(float(fan_in))
        w = jax.random.uniform(kw, (fan_in, fan_out), jnp.float32,
                               minval=-bound, maxval=bound)
        b = jax.random.uniform(kb, (fan_out,), jnp.float32,
                               minval=-bound, maxval=bound)
        params += [w, b]
    return tuple(params)


@jax.jit
def edge_model_forward(node_feats, edge_idx, params):
    """Equivalent of EdgeModel.forward(node_feats, edge_idx) -> [E]."""
    w1, b1, w2, b2, w3, b3 = params
    hp = lax.Precision.HIGHEST
    num_nodes, in_f = node_feats.shape
    h1_dim = w1.shape[1]
    h2_dim = w2.shape[1]
    num_edges = edge_idx.shape[1]

    # Weights in (out, in) orientation for h = W @ x; biases as column vectors.
    b1c = b1.reshape(h1_dim, 1).astype(jnp.float32)
    b2c = b2.reshape(h2_dim, 1).astype(jnp.float32)
    w3c = w3.reshape(h2_dim, 1).astype(jnp.float32)
    b3c = b3.reshape(1, 1).astype(jnp.float32)
    w2t = w2.T.astype(jnp.float32)                         # [H2, H1]

    nft = node_feats.T.astype(jnp.float32)                 # [F, N]
    cparams = pltpu.CompilerParams(dimension_semantics=("parallel",),
                                   vmem_limit_bytes=_VMEM_LIMIT_BYTES)

    if num_nodes <= _INKERNEL_GATHER_MAX_NODES:
        # ---- Primary path: in-kernel one-hot gather fused with layer 1. ----
        n_pad = pl.cdiv(num_nodes, 8) * 8
        # Per-edge VMEM: 2 f32 one-hots + i32 iota + masks/temps + I/O buffers.
        per_edge = 16 * n_pad + 768
        tile_e = _pick_tile_e(num_edges, per_edge)
        e_pad = pl.cdiv(num_edges, tile_e) * tile_e

        # Per-node layer-1 projections (tiny wrapper matmuls), nodes zero-padded.
        nft_p = jnp.pad(nft, ((0, 0), (0, n_pad - num_nodes)))
        p_src = jnp.dot(w1[:in_f].T.astype(jnp.float32), nft_p,
                        precision=hp)                      # [H1, n_pad]
        p_dst = jnp.dot(w1[in_f:].T.astype(jnp.float32), nft_p,
                        precision=hp)                      # [H1, n_pad]

        # Pad the cheap int32 index array (not gathered features).
        eidx = jnp.pad(edge_idx.astype(jnp.int32),
                       ((0, 0), (0, e_pad - num_edges)))   # [2, e_pad]

        out = pl.pallas_call(
            edge_mlp_gather_kernel,
            out_shape=jax.ShapeDtypeStruct((1, e_pad), jnp.float32),
            grid_spec=pltpu.PrefetchScalarGridSpec(
                num_scalar_prefetch=0,
                grid=(e_pad // tile_e,),
                in_specs=[
                    pl.BlockSpec((2, tile_e), lambda i: (0, i)),   # edge indices
                    pl.BlockSpec(p_src.shape, lambda i: (0, 0)),   # resident
                    pl.BlockSpec(p_dst.shape, lambda i: (0, 0)),
                    pl.BlockSpec(b1c.shape, lambda i: (0, 0)),
                    pl.BlockSpec(w2t.shape, lambda i: (0, 0)),
                    pl.BlockSpec(b2c.shape, lambda i: (0, 0)),
                    pl.BlockSpec(w3c.shape, lambda i: (0, 0)),
                    pl.BlockSpec(b3c.shape, lambda i: (0, 0)),
                ],
                out_specs=pl.BlockSpec((1, tile_e), lambda i: (0, i)),
            ),
            compiler_params=cparams,
        )(eidx, p_src, p_dst, b1c, w2t, b2c, w3c, b3c)
    else:
        # ---- Fallback for very large node counts: XLA-side gather. ----------
        per_edge = 512                                     # fused x + temps + I/O
        tile_e = _pick_tile_e(num_edges, per_edge)
        e_pad = pl.cdiv(num_edges, tile_e) * tile_e

        eidx = jnp.pad(edge_idx.astype(jnp.int32),
                       ((0, 0), (0, e_pad - num_edges)))
        # Single fused [2F, e_pad] slab -> one layer-1 matmul, one DMA stream.
        x = jnp.concatenate([jnp.take(nft, eidx[0], axis=1),
                             jnp.take(nft, eidx[1], axis=1)], axis=0)
        w1t = w1.T.astype(jnp.float32)                     # [H1, 2F]

        out = pl.pallas_call(
            edge_mlp_kernel,
            out_shape=jax.ShapeDtypeStruct((1, e_pad), jnp.float32),
            grid_spec=pltpu.PrefetchScalarGridSpec(
                num_scalar_prefetch=0,
                grid=(e_pad // tile_e,),
                in_specs=[
                    pl.BlockSpec((2 * in_f, tile_e), lambda i: (0, i)),
                    pl.BlockSpec(w1t.shape, lambda i: (0, 0)),
                    pl.BlockSpec(b1c.shape, lambda i: (0, 0)),
                    pl.BlockSpec(w2t.shape, lambda i: (0, 0)),
                    pl.BlockSpec(b2c.shape, lambda i: (0, 0)),
                    pl.BlockSpec(w3c.shape, lambda i: (0, 0)),
                    pl.BlockSpec(b3c.shape, lambda i: (0, 0)),
                ],
                out_specs=pl.BlockSpec((1, tile_e), lambda i: (0, i)),
            ),
            compiler_params=cparams,
        )(x, w1t, b1c, w2t, b2c, w3c, b3c)

    return out[0, :num_edges]                              # [E]  (squeeze(1))


def edge_model_reference(node_feats, edge_idx, params):
    """Pure-JAX reference for correctness checking."""
    w1, b1, w2, b2, w3, b3 = params
    hp = lax.Precision.HIGHEST
    ef = jnp.concatenate(
        [node_feats[edge_idx[0]], node_feats[edge_idx[1]]], axis=1)
    h = jnp.maximum(jnp.dot(ef, w1, precision=hp) + b1, 0.0)
    h = jnp.maximum(jnp.dot(h, w2, precision=hp) + b2, 0.0)
    o = jnp.maximum(jnp.dot(h, w3, precision=hp) + b3, 0.0)
    return o[:, 0]


if __name__ == "__main__":
    key = jax.random.PRNGKey(0)
    k_params, k_nodes, k_edges = jax.random.split(key, 3)

    in_size = 3
    num_nodes = 10
    num_edges = 12

    params = init_edge_model_params(k_params, in_size=in_size,
                                    hidden_size1=16, hidden_size2=16)
    node_feats = jax.random.normal(k_nodes, (num_nodes, in_size), jnp.float32)
    edge_idx = jax.random.randint(k_edges, (2, num_edges), 0, num_nodes,
                                  dtype=jnp.int32)

    out = edge_model_forward(node_feats, edge_idx, params)
    out = jax.block_until_ready(out)

    ref = edge_model_reference(node_feats, edge_idx, params)
    assert out.shape == (num_edges,)
    assert jnp.allclose(out, ref, atol=1e-4, rtol=1e-4), (
        "max abs err %r" % float(jnp.max(jnp.abs(out - ref))))

    print("KERNEL_OK")
</pallas_src>

<mosaic_0001>
module attributes {stable_mosaic.version = 11 : i64} {
  func.func @edge_mlp_gather_kernel(%arg0: i32, %arg1: memref<2x128xi32, #tpu.memory_space<vmem>>, %arg2: memref<16x16xf32, #tpu.memory_space<vmem>>, %arg3: memref<16x16xf32, #tpu.memory_space<vmem>>, %arg4: memref<16x1xf32, #tpu.memory_space<vmem>>, %arg5: memref<16x16xf32, #tpu.memory_space<vmem>>, %arg6: memref<16x1xf32, #tpu.memory_space<vmem>>, %arg7: memref<16x1xf32, #tpu.memory_space<vmem>>, %arg8: memref<1x1xf32, #tpu.memory_space<vmem>>, %arg9: memref<1x128xf32, #tpu.memory_space<vmem>>) attributes {dimension_semantics = [#tpu.dimension_semantics<parallel>], iteration_bounds = array<i64: 1>, scalar_prefetch = 0 : i64, scratch_operands = 0 : i64, tpu.core_type = #tpu.core_type<tc>, window_params = [{transform_indices = @transform_0, window_bounds = array<i64: 2, 128>}, {pipeline_mode = #tpu.pipeline_mode<synchronous>, transform_indices = @transform_1, window_bounds = array<i64: 16, 16>}, {pipeline_mode = #tpu.pipeline_mode<synchronous>, transform_indices = @transform_2, window_bounds = array<i64: 16, 16>}, {pipeline_mode = #tpu.pipeline_mode<synchronous>, transform_indices = @transform_3, window_bounds = array<i64: 16, 1>}, {pipeline_mode = #tpu.pipeline_mode<synchronous>, transform_indices = @transform_4, window_bounds = array<i64: 16, 16>}, {pipeline_mode = #tpu.pipeline_mode<synchronous>, transform_indices = @transform_5, window_bounds = array<i64: 16, 1>}, {pipeline_mode = #tpu.pipeline_mode<synchronous>, transform_indices = @transform_6, window_bounds = array<i64: 16, 1>}, {pipeline_mode = #tpu.pipeline_mode<synchronous>, transform_indices = @transform_7, window_bounds = array<i64: 1, 1>}, {transform_indices = @transform_8, window_bounds = array<i64: 1, 128>}]} {
    %c0 = arith.constant 0 : index
    %c0_0 = arith.constant 0 : index
    %0 = vector.load %arg1[%c0, %c0_0] : memref<2x128xi32, #tpu.memory_space<vmem>>, vector<2x128xi32>
    %1 = tpu.iota {dimensions = array<i32: 0>} : vector<16x128xi32>
    %2 = vector.extract_strided_slice %0 {offsets = [0, 0], sizes = [1, 128], strides = [1, 1]} : vector<2x128xi32> to vector<1x128xi32>
    %3 = vector.broadcast %2 : vector<1x128xi32> to vector<16x128xi32>
    %4 = arith.cmpi eq, %1, %3 : vector<16x128xi32>
    %5 = arith.extui %4 : vector<16x128xi1> to vector<16x128xi32>
    %6 = arith.sitofp %5 : vector<16x128xi32> to vector<16x128xf32>
    %7 = vector.extract_strided_slice %0 {offsets = [1, 0], sizes = [1, 128], strides = [1, 1]} : vector<2x128xi32> to vector<1x128xi32>
    %8 = vector.broadcast %7 : vector<1x128xi32> to vector<16x128xi32>
    %9 = arith.cmpi eq, %1, %8 : vector<16x128xi32>
    %10 = arith.extui %9 : vector<16x128xi1> to vector<16x128xi32>
    %11 = arith.sitofp %10 : vector<16x128xi32> to vector<16x128xf32>
    %c0_1 = arith.constant 0 : index
    %c0_2 = arith.constant 0 : index
    %12 = vector.load %arg2[%c0_1, %c0_2] : memref<16x16xf32, #tpu.memory_space<vmem>>, vector<16x16xf32>
    %cst = arith.constant dense<0.000000e+00> : vector<16x128xf32>
    %13 = tpu.matmul %12, %6, %cst {dimension_numbers = #tpu.dot_dimension_numbers<[1], [0], [0], [1], [0, 0, 1, 1], [], []>, precision = #tpu.contract_precision<fp32>} : vector<16x16xf32>, vector<16x128xf32>, vector<16x128xf32> -> vector<16x128xf32>
    %c0_3 = arith.constant 0 : index
    %c0_4 = arith.constant 0 : index
    %14 = vector.load %arg3[%c0_3, %c0_4] : memref<16x16xf32, #tpu.memory_space<vmem>>, vector<16x16xf32>
    %cst_5 = arith.constant dense<0.000000e+00> : vector<16x128xf32>
    %15 = tpu.matmul %14, %11, %cst_5 {dimension_numbers = #tpu.dot_dimension_numbers<[1], [0], [0], [1], [0, 0, 1, 1], [], []>, precision = #tpu.contract_precision<fp32>} : vector<16x16xf32>, vector<16x128xf32>, vector<16x128xf32> -> vector<16x128xf32>
    %16 = arith.addf %13, %15 : vector<16x128xf32>
    %c0_6 = arith.constant 0 : index
    %c0_7 = arith.constant 0 : index
    %17 = vector.load %arg4[%c0_6, %c0_7] : memref<16x1xf32, #tpu.memory_space<vmem>>, vector<16x1xf32>
    %18 = vector.broadcast %17 : vector<16x1xf32> to vector<16x128xf32>
    %19 = arith.addf %16, %18 : vector<16x128xf32>
    %cst_8 = arith.constant 0.000000e+00 : f32
    %20 = vector.broadcast %cst_8 : f32 to vector<16x128xf32>
    %21 = arith.maximumf %19, %20 : vector<16x128xf32>
    %c0_9 = arith.constant 0 : index
    %c0_10 = arith.constant 0 : index
    %22 = vector.load %arg5[%c0_9, %c0_10] : memref<16x16xf32, #tpu.memory_space<vmem>>, vector<16x16xf32>
    %cst_11 = arith.constant dense<0.000000e+00> : vector<16x128xf32>
    %23 = tpu.matmul %22, %21, %cst_11 {dimension_numbers = #tpu.dot_dimension_numbers<[1], [0], [0], [1], [0, 0, 1, 1], [], []>, precision = #tpu.contract_precision<fp32>} : vector<16x16xf32>, vector<16x128xf32>, vector<16x128xf32> -> vector<16x128xf32>
    %c0_12 = arith.constant 0 : index
    %c0_13 = arith.constant 0 : index
    %24 = vector.load %arg6[%c0_12, %c0_13] : memref<16x1xf32, #tpu.memory_space<vmem>>, vector<16x1xf32>
    %25 = vector.broadcast %24 : vector<16x1xf32> to vector<16x128xf32>
    %26 = arith.addf %23, %25 : vector<16x128xf32>
    %cst_14 = arith.constant 0.000000e+00 : f32
    %27 = vector.broadcast %cst_14 : f32 to vector<16x128xf32>
    %28 = arith.maximumf %26, %27 : vector<16x128xf32>
    %c0_15 = arith.constant 0 : index
    %c0_16 = arith.constant 0 : index
    %29 = vector.load %arg7[%c0_15, %c0_16] : memref<16x1xf32, #tpu.memory_space<vmem>>, vector<16x1xf32>
    %30 = vector.broadcast %29 : vector<16x1xf32> to vector<16x128xf32>
    %31 = arith.mulf %28, %30 : vector<16x128xf32>
    %cst_17 = arith.constant dense<0.000000e+00> : vector<128xf32>
    %32 = vector.multi_reduction <add>, %31, %cst_17 [0] : vector<16x128xf32> to vector<128xf32>
    %33 = vector.shape_cast %32 : vector<128xf32> to vector<1x128xf32>
    %c0_18 = arith.constant 0 : index
    %c0_19 = arith.constant 0 : index
    %34 = vector.load %arg8[%c0_18, %c0_19] : memref<1x1xf32, #tpu.memory_space<vmem>>, vector<1x1xf32>
    %35 = vector.broadcast %34 : vector<1x1xf32> to vector<1x128xf32>
    %36 = arith.addf %33, %35 : vector<1x128xf32>
    %cst_20 = arith.constant 0.000000e+00 : f32
    %37 = vector.broadcast %cst_20 : f32 to vector<1x128xf32>
    %38 = arith.maximumf %36, %37 : vector<1x128xf32>
    %c0_21 = arith.constant 0 : index
    %c0_22 = arith.constant 0 : index
    %39 = vector.load %arg9[%c0_21, %c0_22] : memref<1x128xf32, #tpu.memory_space<vmem>>, vector<1x128xf32>
    tpu.vector_store %arg9[%c0_21, %c0_22], %38 {strides = array<i32>} : memref<1x128xf32, #tpu.memory_space<vmem>>, vector<1x128xf32>,
    return
  }
  func.func @transform_0(%arg0: i32) -> (i32, i32) {
    %c0_i32 = arith.constant 0 : i32
    %c0_i32_0 = arith.constant 0 : i32
    return %c0_i32, %arg0 : i32, i32
  }
  func.func @transform_1(%arg0: i32) -> (i32, i32) {
    %c0_i32 = arith.constant 0 : i32
    %c0_i32_0 = arith.constant 0 : i32
    %c0_i32_1 = arith.constant 0 : i32
    return %c0_i32, %c0_i32_0 : i32, i32
  }
  func.func @transform_2(%arg0: i32) -> (i32, i32) {
    %c0_i32 = arith.constant 0 : i32
    %c0_i32_0 = arith.constant 0 : i32
    %c0_i32_1 = arith.constant 0 : i32
    return %c0_i32, %c0_i32_0 : i32, i32
  }
  func.func @transform_3(%arg0: i32) -> (i32, i32) {
    %c0_i32 = arith.constant 0 : i32
    %c0_i32_0 = arith.constant 0 : i32
    %c0_i32_1 = arith.constant 0 : i32
    return %c0_i32, %c0_i32_0 : i32, i32
  }
  func.func @transform_4(%arg0: i32) -> (i32, i32) {
    %c0_i32 = arith.constant 0 : i32
    %c0_i32_0 = arith.constant 0 : i32
    %c0_i32_1 = arith.constant 0 : i32
    return %c0_i32, %c0_i32_0 : i32, i32
  }
  func.func @transform_5(%arg0: i32) -> (i32, i32) {
    %c0_i32 = arith.constant 0 : i32
    %c0_i32_0 = arith.constant 0 : i32
    %c0_i32_1 = arith.constant 0 : i32
    return %c0_i32, %c0_i32_0 : i32, i32
  }
  func.func @transform_6(%arg0: i32) -> (i32, i32) {
    %c0_i32 = arith.constant 0 : i32
    %c0_i32_0 = arith.constant 0 : i32
    %c0_i32_1 = arith.constant 0 : i32
    return %c0_i32, %c0_i32_0 : i32, i32
  }
  func.func @transform_7(%arg0: i32) -> (i32, i32) {
    %c0_i32 = arith.constant 0 : i32
    %c0_i32_0 = arith.constant 0 : i32
    %c0_i32_1 = arith.constant 0 : i32
    return %c0_i32, %c0_i32_0 : i32, i32
  }
  func.func @transform_8(%arg0: i32) -> (i32, i32) {
    %c0_i32 = arith.constant 0 : i32
    %c0_i32_0 = arith.constant 0 : i32
    return %c0_i32, %arg0 : i32, i32
  }
}

</mosaic_0001>

<bundles_post_ra>
// kernel: edge_model_forward.1
= control target key start
LH: loop header
LB: loop body
LE: loop exit
PB: predicated region body
PF: predicated region fallthrough
CT: control target
= control target key end

     0   :  { %v32_v0 = vlaneseq  ;;  %vm59_vm0 = vcmask 130048   ;;  %v1873_v7 = vmov 0   ;;  %v1874_v29 = vmov 1.0   ;;  %s2152_s0 = inlined_call_operand.vmem [shape: s32[2,128], index: 0, kind: input, shape index: {}]   ;;  %s2153_s2 = inlined_call_operand.vmem [shape: f32[16,16], index: 2, kind: input, shape index: {}]   ;;  %s2154_s3 = inlined_call_operand.vmem [shape: f32[16,1], index: 3, kind: input, shape index: {}]   ;;  %s2155_s7 = inlined_call_operand.<no memory space> [shape: f32[1,1], index: 7, kind: input, shape index: {}]   ;;  %s2156_s1 = inlined_call_operand.vmem [shape: f32[16,16], index: 1, kind: input, shape index: {}]   ;;  %s2157_s6 = inlined_call_operand.vmem [shape: f32[16,1], index: 6, kind: input, shape index: {}]   ;;  %s2158_s4 = inlined_call_operand.vmem [shape: f32[16,16], index: 4, kind: input, shape index: {}]   ;;  %s2159_s5 = inlined_call_operand.vmem [shape: f32[16,1], index: 5, kind: input, shape index: {}]   ;;  %s2160_s8 = inlined_call_operand.vmem [shape: f32[1,128], index: 8, kind: output, shape index: {}]  }
   0x1   :  { %v57_v1 = vld [vmem:[%s2153_s2] sm:$0xff]  ;;  %v58_v2 = vld [vmem:[%s2153_s2 + $0x8] sm:$0xff]  ;;  %v13_v3 = vstv %s2155_s7  ;;  %1871 = vset.pattern.permute.xlu0 %v1873_v7  ;;  %1872 = vset.pattern.permute.xlu1 %v1873_v7  ;;  %v1875_v32 = vmov 0.0  }
   0x2   :  { %v1930_v4 = vshrl.u32 %v32_v0, 7  ;;  %v61_v5 = vsel %vm59_vm0, %v57_v1, 0  ;;  %v64_v6 = vsel %vm59_vm0, %v58_v2, 0  ;;  %v1077_v8 = vld [vmem:[%s2154_s3 + $0x8] sm:$0xff]  ;;  %14 = vst [vmem:[#allocation2] sm:$0x1] %v13_v3 }
   0x3   :  { %v31_v9 = vld [vmem:[%s2152_s0] sm:$0x3]  ;;  %v1940_v10 = vand.u32 4294901760, %v61_v5  ;;  %v1942_v11 = vand.u32 4294901760, %v64_v6  ;;  %1085 = vperm.xlu0 %1871, %v1077_v8   ;;  %v56_v19 = vld [vmem:[%s2156_s1 + $0x8] sm:$0xff] }
   0x4   :  { %v34_v12 = vadd.s32 8, %v1930_v4  ;;  %v47_v13 = vsub.s32 1, %v1930_v4  ;;  %v37_v14 = vsub.s32 0, %v1930_v4  ;;  %v1076_v15 = vld [vmem:[%s2154_s3] sm:$0xff]  ;;  %v572_v27 = vsel %vm59_vm0, %v56_v19, 0 }
   0x5   :  { %v1951_v16 = vsub.f32 %v61_v5, %v1940_v10  ;;  %v1954_v17 = vsub.f32 %v64_v6, %v1942_v11  ;;  %1753 = vmatprep.mubr.f32.mxu1 %v1940_v10  ;;  %v55_v18 = vld [vmem:[%s2156_s1] sm:$0xff]  ;;  %v2009_v43 = vand.u32 4294901760, %v572_v27 }
   0x6   :  { %v48_v20 = vrot.slane %v31_v9, %v47_v13  ;;  %v38_v23 = vrot.slane %v31_v9, %v37_v14  ;;  %v569_v26 = vsel %vm59_vm0, %v55_v18, 0  ;;  %v1616_v28 = vld [vmem:[%s2157_s6] sm:$0xff]  ;;  %v1095_v13 = vld [vmem:[%s2159_s5 + $0x8] sm:$0xff] }
   0x7   :  { %v135_v21 = vand.u32 4294901760, %v1951_v16  ;;  %v145_v22 = vand.u32 4294901760, %v1954_v17  ;;  %1080 = vperm.xlu0 %1871, %v1076_v15   ;;  %v2004_v40 = vand.u32 4294901760, %v569_v26  ;;  %v2023_v52 = vsub.f32 %v572_v27, %v2009_v43  ;;  %v1092_v5 = vld [vmem:[%s2158_s4] sm:$0xff]  ;;  %v1617_v15 = vld [vmem:[%s2157_s6 + $0x8] sm:$0xff] }
   0x8   :  { %vm1967_vm1 = vcmp.eq.s32.totalorder %v34_v12, %v48_v20  ;;  %vm1972_vm2 = vcmp.eq.s32.totalorder %v1930_v4, %v48_v20  ;;  %vm2000_vm3 = vcmp.eq.s32.totalorder %v34_v12, %v38_v23  ;;  %vm2012_vm4 = vcmp.eq.s32.totalorder %v1930_v4, %v38_v23  ;;  %v1094_v12 = vld [vmem:[%s2159_s5] sm:$0xff] }
   0x9   :  { %1742 = vmatprep.subr.msk.mxu0 %vm1967_vm1, %v1874_v29  ;;  %v136_v30 = vsub.f32 %v1951_v16, %v135_v21  ;;  %v146_v31 = vsub.f32 %v1954_v17, %v145_v22  ;;  %v1657_v33 = vsel %vm1967_vm1, 1.0, %v1875_v32  ;;  %v1656_v34 = vsel %vm1972_vm2, 1.0, %v1875_v32  ;;  %v1637_v45 = vld [vmem:[#allocation2] sm:$0x1]  ;;  %1098 = vperm.xlu1 %1872, %v1094_v12  }
   0xa   :  { %1743 = vmatpush3.msk.msra.mxu0 %vm1967_vm1, %v1874_v29  ;;  %v183_v35 = vsub.f32 %v1657_v33, %v1657_v33  ;;  %v190_v36 = vsub.f32 %v1656_v34, %v1656_v34  ;;  %v1655_v48 = vsel %vm2000_vm3, 1.0, %v1875_v32  ;;  %v2020_v49 = vsub.f32 %v569_v26, %v2004_v40 }
   0xb   :  { %1744 = vmatprep.subr.msk.mxu0 %vm1972_vm2, %v1874_v29  ;;  %v137_v37 = vand.u32 4294901760, %v136_v30  ;;  %v147_v38 = vand.u32 4294901760, %v146_v31  ;;  %1620 = vperm.xlu0 %1871, %v1616_v28   ;;  %v1654_v53 = vsel %vm2012_vm4, 1.0, %v1875_v32  ;;  %v691_v54 = vsub.f32 %v1655_v48, %v1655_v48 }
   0xc   :  { %1745 = vmatpush3.msk.msra.mxu0 %vm1972_vm2, %v1874_v29  ;;  %v184_v41 = vand.u32 4294901760, %v183_v35  ;;  %v191_v42 = vand.u32 4294901760, %v190_v36  ;;  %v643_v55 = vand.u32 4294901760, %v2020_v49  ;;  %v698_v56 = vsub.f32 %v1654_v53, %v1654_v53 }
   0xd   :  { %1746 = vmatprep.mubr.f32.mxu0 %v137_v37  ;;  %1756 = vmatprep.subr.mxu0 %v183_v35  ;;  %v653_v57 = vand.u32 4294901760, %v2023_v52  ;;  %v692_v58 = vand.u32 4294901760, %v691_v54  ;;  %v1107_v6 = vsel %vm59_vm0, %v1092_v5, 0 }
   0xe   :  { %1747 = vmatmul.mubr.f32.vlgmr.msra.gmra.mxu0 %v147_v38  ;;  %v185_v46 = vsub.f32 %v183_v35, %v184_v41  ;;  %v192_v47 = vsub.f32 %v190_v36, %v191_v42  ;;  %v644_v59 = vsub.f32 %v2020_v49, %v643_v55  ;;  %v699_v60 = vand.u32 4294901760, %v698_v56  ;;  %1103 = vperm.xlu1 %1872, %v1095_v13  }
   0xf   :  { %1757 = vmatpush3.msra.mxu0 %v183_v35  ;;  %1760 = vmatprep.mubr.f32.mxu0 %v1951_v16  ;;  %v654_v61 = vsub.f32 %v2023_v52, %v653_v57  ;;  %v693_v62 = vsub.f32 %v691_v54, %v692_v58  ;;  %v2113_v7 = vand.u32 4294901760, %v1107_v6 }
  0x10   :  { %v186_v50 = vand.u32 4294901760, %v185_v46  ;;  %v193_v51 = vand.u32 4294901760, %v192_v47  ;;  %1758 = vmatprep.subr.mxu0 %v190_v36  ;;  %1640 = vperm.xlu0 %1871, %v1637_v45   ;;  %v645_v63 = vand.u32 4294901760, %v644_v59  ;;  %v700_v0 = vsub.f32 %v698_v56, %v699_v60 }
  0x11   :  { %1759 = vmatpush3.msra.mxu0 %v190_v36  ;;  %v655_v1 = vand.u32 4294901760, %v654_v61  ;;  %v694_v2 = vand.u32 4294901760, %v693_v62  ;;  %v2116_v8 = vsub.f32 %v1107_v6, %v2113_v7 }
  0x12   :  { %1749 = vmatprep.subr.mxu1 %v186_v50  ;;  %1761 = vmatmul.mubr.f32.vlgmr.msra.gmra.mxu0 %v1954_v17  ;;  %v701_v3 = vand.u32 4294901760, %v700_v0 }
  0x13   :  { %1750 = vmatpush3.msra.mxu1 %v186_v50  ;;  %1770 = vmatprep.subr.mxu0 %v184_v41  ;;  %v1181_v9 = vand.u32 4294901760, %v2116_v8 }
  0x14   :  { %1751 = vmatprep.subr.mxu1 %v193_v51  ;;  %1771 = vmatpush3.msra.mxu0 %v184_v41  ;;  %v1093_v41 = vld [vmem:[%s2158_s4 + $0x8] sm:$0xff] }
  0x15   :  { %1752 = vmatpush3.msra.mxu1 %v193_v51  ;;  %1772 = vmatprep.subr.mxu0 %v191_v42  ;;  %v1110_v46 = vsel %vm59_vm0, %v1093_v41, 0 }
  0x16   :  { %1754 = vmatmul.mubr.f32.vlgmr.msra.gmra.mxu1 %v1942_v11  ;;  %1763 = vmatprep.subr.msk.mxu1 %vm1967_vm1, %v1874_v29  ;;  %v2136_v51 = vand.u32 4294901760, %v1110_v46 }
  0x17   :  { %1764 = vmatpush3.msk.msra.mxu1 %vm1967_vm1, %v1874_v29  ;;  %1767 = vmatprep.mubr.f32.mxu1 %v135_v21 }
  0x18   :  { %1765 = vmatprep.subr.msk.mxu1 %vm1972_vm2, %v1874_v29  ;;  %1773 = vmatpush3.msra.mxu0 %v191_v42 }
  0x19   :  { %1766 = vmatpush3.msk.msra.mxu1 %vm1972_vm2, %v1874_v29  ;;  %1774 = vmatprep.mubr.f32.mxu0 %v1940_v10 }
  0x1a   :  { %1768 = vmatmul.mubr.f32.vlgmr.msra.gmra.mxu1 %v145_v22  ;;  %1775 = vmatmul.mubr.f32.vlgmr.msra.gmra.mxu0 %v1942_v11 }
  0x1b   :  { %1777 = vmatprep.subr.msk.mxu1 %vm1967_vm1, %v1874_v29  ;;  %1784 = vmatprep.subr.msk.mxu0 %vm2000_vm3, %v1874_v29 }
  0x1c   :  { %1778 = vmatpush3.msk.msra.mxu1 %vm1967_vm1, %v1874_v29  ;;  %1785 = vmatpush3.msk.msra.mxu0 %vm2000_vm3, %v1874_v29 }
  0x1d   :  { %1779 = vmatprep.subr.msk.mxu1 %vm1972_vm2, %v1874_v29  ;;  %1786 = vmatprep.subr.msk.mxu0 %vm2012_vm4, %v1874_v29 }
  0x1e   :  { %1780 = vmatpush3.msk.msra.mxu1 %vm1972_vm2, %v1874_v29  ;;  %1781 = vmatprep.mubr.f32.mxu1 %v1940_v10  ;;  %v1182_v10 = vsub.f32 %v2116_v8, %v1181_v9 }
  0x1f   :  { %1787 = vmatpush3.msk.msra.mxu0 %vm2012_vm4, %v1874_v29  ;;  %1788 = vmatprep.mubr.f32.mxu0 %v645_v63 }
  0x20   :  { %1782 = vmatmul.mubr.f32.vlgmr.msra.gmra.mxu1 %v1942_v11  ;;  %1789 = vmatmul.mubr.f32.vlgmr.msra.gmra.mxu0 %v655_v1  ;;  %v1183_v11 = vand.u32 4294901760, %v1182_v10 }
  0x21   :  { %1791 = vmatprep.subr.mxu1 %v694_v2  ;;  %1798 = vmatprep.subr.mxu0 %v691_v54 }
  0x22   :  { %1792 = vmatpush3.msra.mxu1 %v694_v2  ;;  %1799 = vmatpush3.msra.mxu0 %v691_v54 }
  0x23   :  { %1793 = vmatprep.subr.mxu1 %v701_v3  ;;  %1800 = vmatprep.subr.mxu0 %v698_v56 }
  0x24   :  { %1794 = vmatpush3.msra.mxu1 %v701_v3  ;;  %1795 = vmatprep.mubr.f32.mxu1 %v2004_v40 }
  0x25   :  { %1801 = vmatpush3.msra.mxu0 %v698_v56  ;;  %1802 = vmatprep.mubr.f32.mxu0 %v2020_v49 }
  0x26   :  { %1796 = vmatmul.mubr.f32.vlgmr.msra.gmra.mxu1 %v2009_v43  ;;  %1803 = vmatmul.mubr.f32.vlgmr.msra.gmra.mxu0 %v2023_v52 }
  0x27   :  { %1805 = vmatprep.subr.msk.mxu1 %vm2000_vm3, %v1874_v29  ;;  %1812 = vmatprep.subr.mxu0 %v692_v58 }
  0x28   :  { %1806 = vmatpush3.msk.msra.mxu1 %vm2000_vm3, %v1874_v29  ;;  %1813 = vmatpush3.msra.mxu0 %v692_v58 }
  0x29   :  { %1807 = vmatprep.subr.msk.mxu1 %vm2012_vm4, %v1874_v29  ;;  %1814 = vmatprep.subr.mxu0 %v699_v60 }
  0x2a   :  { %1808 = vmatpush3.msk.msra.mxu1 %vm2012_vm4, %v1874_v29  ;;  %1809 = vmatprep.mubr.f32.mxu1 %v643_v55 }
  0x2b   :  { %1815 = vmatpush3.msra.mxu0 %v699_v60  ;;  %1816 = vmatprep.mubr.f32.mxu0 %v2004_v40 }
  0x2c   :  { %1810 = vmatmul.mubr.f32.vlgmr.msra.gmra.mxu1 %v653_v57  ;;  %1817 = vmatmul.mubr.f32.vlgmr.msra.gmra.mxu0 %v2009_v43  ;;  %v1190_v57 = vsub.f32 %v1110_v46, %v2136_v51 }
  0x2d   :  { %1819 = vmatprep.subr.msk.mxu1 %vm2000_vm3, %v1874_v29  ;;  %1823 = vmatprep.mubr.f32.mxu1 %v2004_v40 }
  0x2e   :  { %1820 = vmatpush3.msk.msra.mxu1 %vm2000_vm3, %v1874_v29  ;;  %1830 = vmatprep.mubr.f32.mxu0 %v1183_v11  ;;  %v1191_v1 = vand.u32 4294901760, %v1190_v57 }
  0x2f   :  { %1821 = vmatprep.subr.msk.mxu1 %vm2012_vm4, %v1874_v29  ;;  %1625 = vperm.xlu1 %1872, %v1617_v15  }
  0x30   :  { %1822 = vmatpush3.msk.msra.mxu1 %vm2012_vm4, %v1874_v29  ;;  %v1192_v12 = vsub.f32 %v1190_v57, %v1191_v1 }
  0x31   :  { %1824 = vmatmul.mubr.f32.vlgmr.msra.gmra.mxu1 %v2009_v43 }
  0x32   :  { %1837 = vmatprep.mubr.f32.mxu1 %v2113_v7 }
  0x7e   :  { %v1086_v58 = vpop.permute.xlu0 %1085 }
  0x82   :  { %v1081_v6 = vpop.permute.xlu0 %1080 }
  0xce   :  { %v1748_v16 = vpop.f32.mrf.mxu0 }
  0xd0   :  { %v139_v17 = vpop.f32.mrf.mxu0 }
  0xd2   :  { %v1762_v18 = vpop.f32.mrf.mxu0 }
  0xd4   :  { %v312_v20 = vpop.f32.mrf.mxu0 }
  0xd6   :  { %v1755_v19 = vpop.f32.mrf.mxu1 }
  0xd7   :  { %v237_v21 = vadd.f32 %v1755_v19, %v1748_v16 }
  0xd8   :  { %v230_v22 = vpop.f32.mrf.mxu1 }
  0xd9   :  { %v320_v23 = vadd.f32 %v1762_v18, %v237_v21  ;;  %v231_v24 = vadd.f32 %v230_v22, %v139_v17  ;;  %v1193_v18 = vand.u32 4294901760, %v1192_v12 }
  0xda   :  { %v1769_v25 = vpop.f32.mrf.mxu1  ;;  %v1776_v26 = vpop.f32.mrf.mxu0 }
  0xdb   :  { %v313_v27 = vadd.f32 %v312_v20, %v231_v24  ;;  %v403_v28 = vadd.f32 %v1769_v25, %v320_v23 }
  0xdc   :  { %v394_v29 = vpop.f32.mrf.mxu1  ;;  %v479_v30 = vpop.f32.mrf.mxu0 }
  0xdd   :  { %v486_v31 = vadd.f32 %v1776_v26, %v403_v28  ;;  %v395_v32 = vadd.f32 %v394_v29, %v313_v27  ;;  %v1099_v26 = vpop.permute.xlu1 %1098 }
  0xdf   :  { %v480_v33 = vadd.f32 %v479_v30, %v395_v32 }
  0xe0   :  { %v1783_v34 = vpop.f32.mrf.mxu1  ;;  %v1790_v35 = vpop.f32.mrf.mxu0 }
  0xe1   :  { %v565_v36 = vadd.f32 %v1783_v34, %v486_v31  ;;  %v1104_v28 = vpop.permute.xlu1 %1103 }
  0xe2   :  { %v558_v37 = vpop.f32.mrf.mxu1  ;;  %v647_v38 = vpop.f32.mrf.mxu0 }
  0xe3   :  { %v658_v39 = vadd.f32 %v1790_v35, %v565_v36  ;;  %v559_v40 = vadd.f32 %v558_v37, %v480_v33 }
  0xe5   :  { %v648_v42 = vadd.f32 %v647_v38, %v559_v40 }
  0xe6   :  { %v1797_v43 = vpop.f32.mrf.mxu1  ;;  %v1804_v44 = vpop.f32.mrf.mxu0 }
  0xe7   :  { %v745_v45 = vadd.f32 %v1797_v43, %v658_v39 }
  0xe8   :  { %v738_v47 = vpop.f32.mrf.mxu1  ;;  %v820_v48 = vpop.f32.mrf.mxu0 }
  0xe9   :  { %v828_v49 = vadd.f32 %v1804_v44, %v745_v45  ;;  %v739_v50 = vadd.f32 %v738_v47, %v648_v42 }
  0xeb   :  { %v821_v52 = vadd.f32 %v820_v48, %v739_v50 }
  0xec   :  { %v1811_v53 = vpop.f32.mrf.mxu1  ;;  %v1818_v54 = vpop.f32.mrf.mxu0 }
  0xed   :  { %v911_v55 = vadd.f32 %v1811_v53, %v828_v49 }
  0xee   :  { %v902_v56 = vpop.f32.mrf.mxu1  ;;  %v987_v61 = vpop.f32.mrf.mxu0 }
  0xef   :  { %v994_v59 = vadd.f32 %v1818_v54, %v911_v55  ;;  %v903_v60 = vadd.f32 %v902_v56, %v821_v52  ;;  %v1626_v52 = vpop.permute.xlu1 %1625 }
  0xf1   :  { %v988_v62 = vadd.f32 %v987_v61, %v903_v60  ;;  %v1825_v63 = vpop.f32.mrf.mxu1 }
  0xf2   :  { %v1073_v0 = vadd.f32 %v1825_v63, %v994_v59 }
  0xf3   :  { %v1066_v2 = vpop.f32.mrf.mxu1 }
  0xf4   :  { %v1089_v3 = vadd.f32 %v1086_v58, %v1073_v0  ;;  %v1067_v5 = vadd.f32 %v1066_v2, %v988_v62 }
  0xf6   :  { %v1091_v10 = vmax.f32 %v1089_v3, 0.0  ;;  %v1088_v11 = vadd.f32 %v1081_v6, %v1067_v5 }
  0xf8   :  { %v1141_v13 = vand.u32 4294901760, %v1091_v10  ;;  %v1090_v15 = vmax.f32 %v1088_v11, 0.0 }
  0xfa   :  { %v1229_v16 = vsub.f32 %v1091_v10, %v1141_v13  ;;  %v1144_v17 = vand.u32 4294901760, %v1090_v15  ;;  %1826 = vmatprep.subr.mxu0 %v1141_v13 }
  0xfb   :  { %1827 = vmatpush3.msra.mxu0 %v1141_v13 }
  0xfc   :  { %v1236_v19 = vsub.f32 %v1090_v15, %v1144_v17  ;;  %1828 = vmatprep.subr.mxu0 %v1144_v17  ;;  %v1230_v20 = vand.u32 4294901760, %v1229_v16 }
  0xfd   :  { %1829 = vmatpush3.msra.mxu0 %v1144_v17 }
  0xfe   :  { %1840 = vmatprep.subr.mxu0 %v1229_v16  ;;  %1831 = vmatmul.mubr.f32.vlgmr.msra.gmra.mxu0 %v1193_v18  ;;  %v1231_v21 = vsub.f32 %v1229_v16, %v1230_v20  ;;  %v1237_v22 = vand.u32 4294901760, %v1236_v19 }
  0xff   :  { %1841 = vmatpush3.msra.mxu0 %v1229_v16  ;;  %1844 = vmatprep.mubr.f32.mxu0 %v2116_v8 }
 0x100   :  { %1842 = vmatprep.subr.mxu0 %v1236_v19  ;;  %v1232_v23 = vand.u32 4294901760, %v1231_v21  ;;  %v1238_v24 = vsub.f32 %v1236_v19, %v1237_v22 }
 0x101   :  { %1843 = vmatpush3.msra.mxu0 %v1236_v19 }
 0x102   :  { %1833 = vmatprep.subr.mxu1 %v1232_v23  ;;  %1854 = vmatprep.subr.mxu0 %v1230_v20  ;;  %v1239_v25 = vand.u32 4294901760, %v1238_v24 }
 0x103   :  { %1834 = vmatpush3.msra.mxu1 %v1232_v23  ;;  %1845 = vmatmul.mubr.f32.vlgmr.msra.gmra.mxu0 %v1190_v57 }
 0x104   :  { %1855 = vmatpush3.msra.mxu0 %v1230_v20  ;;  %1835 = vmatprep.subr.mxu1 %v1239_v25 }
 0x105   :  { %1856 = vmatprep.subr.mxu0 %v1237_v22  ;;  %1836 = vmatpush3.msra.mxu1 %v1239_v25 }
 0x106   :  { %1857 = vmatpush3.msra.mxu0 %v1237_v22  ;;  %1838 = vmatmul.mubr.f32.vlgmr.msra.gmra.mxu1 %v2136_v51 }
 0x107   :  { %1847 = vmatprep.subr.mxu1 %v1141_v13  ;;  %1851 = vmatprep.mubr.f32.mxu1 %v1181_v9 }
 0x108   :  { %1848 = vmatpush3.msra.mxu1 %v1141_v13  ;;  %1858 = vmatprep.mubr.f32.mxu0 %v2113_v7 }
 0x109   :  { %1849 = vmatprep.subr.mxu1 %v1144_v17  ;;  %1859 = vmatmul.mubr.f32.vlgmr.msra.gmra.mxu0 %v2136_v51 }
 0x10a   :  { %1850 = vmatpush3.msra.mxu1 %v1144_v17 }
 0x10b   :  { %1852 = vmatmul.mubr.f32.vlgmr.msra.gmra.mxu1 %v1191_v1  ;;  %1861 = vmatprep.subr.mxu1 %v1141_v13 }
 0x10c   :  { %1862 = vmatpush3.msra.mxu1 %v1141_v13  ;;  %1865 = vmatprep.mubr.f32.mxu1 %v2113_v7 }
 0x10d   :  { %1863 = vmatprep.subr.mxu1 %v1144_v17 }
 0x10e   :  { %1864 = vmatpush3.msra.mxu1 %v1144_v17 }
 0x10f   :  { %1866 = vmatmul.mubr.f32.vlgmr.msra.gmra.mxu1 %v2136_v51  ;;  %v1621_v51 = vpop.permute.xlu0 %1620 }
 0x113   :  { %v1641_v60 = vpop.permute.xlu0 %1640 }
 0x114   :  { %v1646_v62 = vrot.slane %v1641_v60, %v37_v14 }
 0x1be   :  { %v1832_v27 = vpop.f32.mrf.mxu0 }
 0x1bf   :  { %v1196_v29 = vadd.f32 %v1832_v27, %v1104_v28 }
 0x1c0   :  { %v1185_v8 = vpop.f32.mrf.mxu0 }
 0x1c1   :  { %v1186_v31 = vadd.f32 %v1185_v8, %v1099_v26 }
 0x1c3   :  { %v1846_v9 = vpop.f32.mrf.mxu0 }
 0x1c5   :  { %v1358_v33 = vpop.f32.mrf.mxu0 }
 0x1c6   :  { %v1839_v30 = vpop.f32.mrf.mxu1 }
 0x1c7   :  { %v1283_v32 = vadd.f32 %v1839_v30, %v1196_v29 }
 0x1c8   :  { %v1276_v34 = vpop.f32.mrf.mxu1 }
 0x1c9   :  { %v1366_v35 = vadd.f32 %v1846_v9, %v1283_v32  ;;  %v1277_v36 = vadd.f32 %v1276_v34, %v1186_v31  ;;  %v1860_v7 = vpop.f32.mrf.mxu0 }
 0x1cb   :  { %v1359_v37 = vadd.f32 %v1358_v33, %v1277_v36  ;;  %v1853_v38 = vpop.f32.mrf.mxu1  ;;  %v1525_v43 = vpop.f32.mrf.mxu0 }
 0x1cc   :  { %v1449_v39 = vadd.f32 %v1853_v38, %v1366_v35 }
 0x1cd   :  { %v1440_v40 = vpop.f32.mrf.mxu1 }
 0x1ce   :  { %v1532_v41 = vadd.f32 %v1860_v7, %v1449_v39  ;;  %v1441_v42 = vadd.f32 %v1440_v40, %v1359_v37 }
 0x1cf   :  { %v1867_v44 = vpop.f32.mrf.mxu1 }
 0x1d0   :  { %v1526_v45 = vadd.f32 %v1525_v43, %v1441_v42  ;;  %v1611_v46 = vadd.f32 %v1867_v44, %v1532_v41 }
 0x1d1   :  { %v1604_v47 = vpop.f32.mrf.mxu1 }
 0x1d2   :  { %v1615_v48 = vmax.f32 %v1611_v46, 0.0  ;;  %v1605_v49 = vadd.f32 %v1604_v47, %v1526_v45 }
 0x1d4   :  { %v1614_v50 = vmax.f32 %v1605_v49, 0.0  ;;  %v1629_v53 = vmul.f32 %v1626_v52, %v1615_v48 }
 0x1d6   :  { %v1628_v54 = vmul.f32 %v1621_v51, %v1614_v50 }
 0x1d8   :  { %v1630_v55 = vadd.f32 %v1629_v53, %v1628_v54 }
 0x1da   :  { %v1631_v56 = vrot.slane %v1630_v55, 4 }
 0x1dc   :  { %v1632_v57 = vadd.f32 %v1631_v56, %v1630_v55 }
 0x1de   :  { %v1633_v58 = vrot.slane %v1632_v57, 2 }
 0x1e0   :  { %v1634_v59 = vadd.f32 %v1633_v58, %v1632_v57 }
 0x1e2   :  { %v1635_v61 = vrot.slane %v1634_v59, 1 }
 0x1e4   :  { %v1636_v63 = vadd.f32 %v1635_v61, %v1634_v59 }
 0x1e6   :  { %v1647_v0 = vadd.f32 %v1646_v62, %v1636_v63 }
 0x1e8   :  { %v1648_v1 = vmax.f32 %v1647_v0, 0.0 }
 0x1ea   :  { %1649 = vst [vmem:[%s2160_s8] sm:$0x1] %v1648_v1 }

</bundles_post_ra>
